<compile_context>
chip_gen: v6e
topology: v6e:2x2x1
jax: 0.10.0
libtpu: 0.0.40
codegen_flags: <defaults>
</compile_context>

<pallas_src>
import jax
import jax.numpy as jnp
from jax.experimental import pallas as pl
from jax.experimental.pallas import tpu as pltpu


_TARGET_TILE_BYTES = 8 * 1024 * 1024  # per-buffer log-prob tile target


def _vmem_capacity_bytes():
    try:
        return int(pltpu.get_tpu_info().vmem_capacity_bytes)
    except Exception:  # interpret mode / older jax: assume tightest (v7x) budget
        return 64 * 1024 * 1024


def _nll_tile_kernel(ign_ref, x_ref, t_ref, out_ref, total_ref, count_ref):
    """One grid step: accumulate sum(-logprob[target]) and #valid for a row tile."""
    step = pl.program_id(0)

    @pl.when(step == 0)
    def _init():
        total_ref[...] = jnp.zeros_like(total_ref)
        count_ref[...] = jnp.zeros_like(count_ref)

    x = x_ref[...]                  # (tile_rows, g*C), native dtype
    t = t_ref[...]                  # (tile_rows, g) int32 targets
    ignore = ign_ref[0]
    rows, width = x.shape
    g = t.shape[1]
    c = width // g
    lane_ids = jax.lax.broadcasted_iota(jnp.int32, (rows, width), 1)

    picked = jnp.zeros((rows, 1), jnp.float32)
    valid_cnt = jnp.zeros((rows, 1), jnp.float32)
    for j in range(g):              # static unroll; g = 128 // C (small)
        tj = t[:, j:j + 1]                              # (rows, 1)
        valid = tj != ignore
        in_range = (tj >= 0) & (tj < c)                 # guard packed gather
        hit = (lane_ids == (tj + j * c)) & valid & in_range
        sel = jnp.where(hit, x, jnp.zeros_like(x)).astype(jnp.float32)
        picked = picked + jnp.sum(sel, axis=1, keepdims=True)
        valid_cnt = valid_cnt + valid.astype(jnp.float32)

    total_ref[...] += jnp.sum(-picked, axis=0, keepdims=True)
    count_ref[...] += jnp.sum(valid_cnt, axis=0, keepdims=True)

    @pl.when(step == pl.num_programs(0) - 1)
    def _finalize():
        out_ref[...] = total_ref[...] / count_ref[...]


def _nll_loss_mean(x, t, ignore_index):
    """F.nll_loss(x, t, ignore_index, reduction='mean') via a tiled Pallas kernel."""
    n, c = x.shape
    t = t.astype(jnp.int32)

    # Lane-dense packing: fold 128 // C rows into one 128-lane row when possible.
    if c < 128 and 128 % c == 0 and (128 // c) <= 16:
        g = 128 // c
    else:
        g = 1
    width = g * c

    # Tile sizing: largest multiple-of-8 row-group tile within the VMEM budget.
    itemsize = jnp.dtype(x.dtype).itemsize
    row_bytes = width * itemsize + g * 4
    vmem_cap = _vmem_capacity_bytes()
    budget = min(_TARGET_TILE_BYTES, vmem_cap // 8)  # 2x-buffered stays << VMEM
    n_grp = -(-n // g)
    tile = max(8, (budget // row_bytes) // 8 * 8)
    tile = min(tile, ((n_grp + 7) // 8) * 8)
    n_tiles = -(-n_grp // tile)

    # Pad rows so the grid divides evenly; padded targets = ignore_index so
    # they contribute neither to the numerator nor to the denominator.
    rows_needed = n_tiles * tile * g
    pad_rows = rows_needed - n
    if pad_rows:
        x = jnp.pad(x, ((0, pad_rows), (0, 0)))
        t = jnp.pad(t, (0, pad_rows), constant_values=ignore_index)
    xg = x.reshape(n_tiles * tile, width)
    tg = t.reshape(n_tiles * tile, g)
    ign = jnp.array([ignore_index], dtype=jnp.int32)

    bytes_accessed = int(xg.size) * int(itemsize) + int(tg.size) * 4 + 8
    flops = 4 * int(xg.size) * g  # compare/select/add passes over each tile

    out = pl.pallas_call(
        _nll_tile_kernel,
        out_shape=jax.ShapeDtypeStruct((1, 1), jnp.float32),
        grid=(n_tiles,),
        in_specs=[
            pl.BlockSpec(memory_space=pltpu.MemorySpace.SMEM),   # ignore index
            pl.BlockSpec((tile, width), lambda i: (i, 0)),       # log-probs tile
            pl.BlockSpec((tile, g), lambda i: (i, 0)),           # target tile
        ],
        out_specs=pl.BlockSpec(memory_space=pltpu.MemorySpace.VMEM),
        scratch_shapes=[
            pltpu.VMEM((1, 1), jnp.float32),                     # running -sum
            pltpu.VMEM((1, 1), jnp.float32),                     # running count
        ],
        compiler_params=pltpu.CompilerParams(
            dimension_semantics=("arbitrary",),
            vmem_limit_bytes=int(vmem_cap * 3 // 4),
        ),
        cost_estimate=pl.CostEstimate(
            flops=flops, transcendentals=0, bytes_accessed=bytes_accessed),
    )(ign, xg, tg)
    return out[0, 0]


def basic_loss(obj_choice, pair_choice, obj_target, pair_target,
               obj_ignore_index=-100, pair_ignore_index=-100):
    """JAX/Pallas equivalent of BasicLoss.forward. Returns dict of f32 scalars."""
    assert obj_choice.ndim == pair_choice.ndim
    if obj_choice.ndim == 3:
        obj_choice = obj_choice.reshape(-1, obj_choice.shape[-1])
        obj_target = obj_target.reshape(-1)
        pair_choice = pair_choice.reshape(-1, pair_choice.shape[-1])
        pair_target = pair_target.reshape(-1)

    # TODO(synk): when obj/pair shapes & dtypes match, the two streams could ride
    # a leading "parallel" grid axis in a single call to use both v7x TensorCores.
    obj_l = _nll_loss_mean(obj_choice, obj_target, obj_ignore_index)
    pair_l = _nll_loss_mean(pair_choice, pair_target, pair_ignore_index)
    return {"loss": obj_l + pair_l, "obj_loss": obj_l, "pair_loss": pair_l}


def _ref_nll(x, t, ignore_index):
    """Pure-JAX reference matching F.nll_loss(reduction='mean')."""
    valid = t != ignore_index
    picked = jnp.take_along_axis(
        x, jnp.clip(t, 0, x.shape[-1] - 1)[:, None], axis=1)[:, 0]
    return jnp.sum(jnp.where(valid, -picked, 0.0)) / jnp.sum(valid.astype(jnp.float32))


if __name__ == "__main__":
    key = jax.random.PRNGKey(0)
    B, S, C = 2, 8, 32  # batch, seq, num classes -> flattened N = 16 rows

    k1, k2, k3, k4 = jax.random.split(key, 4)
    obj_logits = jax.random.normal(k1, (B, S, C), dtype=jnp.float32)
    pair_logits = jax.random.normal(k2, (B, S, C), dtype=jnp.float32)
    obj_choice = jax.nn.log_softmax(obj_logits, axis=-1)
    pair_choice = jax.nn.log_softmax(pair_logits, axis=-1)

    obj_target = jax.random.randint(k3, (B, S), 0, C, dtype=jnp.int32)
    pair_target = jax.random.randint(k4, (B, S), 0, C, dtype=jnp.int32)
    # Sprinkle in some ignored positions (ignore_index = -100).
    obj_target = obj_target.at[0, 0].set(-100)
    pair_target = pair_target.at[1, 3].set(-100)
    pair_target = pair_target.at[0, 5].set(-100)

    result = basic_loss(obj_choice, pair_choice, obj_target, pair_target)
    result = jax.block_until_ready(result)

    # Verify against pure-JAX reference.
    obj_ref = _ref_nll(obj_choice.reshape(-1, C), obj_target.reshape(-1), -100)
    pair_ref = _ref_nll(pair_choice.reshape(-1, C), pair_target.reshape(-1), -100)
    loss_ref = obj_ref + pair_ref

    assert jnp.allclose(result["obj_loss"], obj_ref, atol=1e-5, rtol=1e-5)
    assert jnp.allclose(result["pair_loss"], pair_ref, atol=1e-5, rtol=1e-5)
    assert jnp.allclose(result["loss"], loss_ref, atol=1e-5, rtol=1e-5)

    print("KERNEL_OK")
</pallas_src>

<mosaic_0001>
module attributes {stable_mosaic.version = 11 : i64} {
  func.func @_nll_tile_kernel(%arg0: i32, %arg1: memref<1xi32, #tpu.memory_space<smem>>, %arg2: memref<8x128xf32, #tpu.memory_space<vmem>>, %arg3: memref<8x4xi32, #tpu.memory_space<vmem>>, %arg4: memref<1x1xf32, #tpu.memory_space<vmem>>, %arg5: memref<1x1xf32, #tpu.memory_space<vmem>>, %arg6: memref<1x1xf32, #tpu.memory_space<vmem>>) attributes {dimension_semantics = [#tpu.dimension_semantics<arbitrary>], iteration_bounds = array<i64: 1>, scalar_prefetch = 0 : i64, scratch_operands = 2 : i64, tpu.core_type = #tpu.core_type<tc>, window_params = [{transform_indices = @transform_0, window_bounds = array<i64: 1>}, {transform_indices = @transform_1, window_bounds = array<i64: 8, 128>}, {transform_indices = @transform_2, window_bounds = array<i64: 8, 4>}, {pipeline_mode = #tpu.pipeline_mode<synchronous>, transform_indices = @transform_3, window_bounds = array<i64: 1, 1>}]} {
    %c0_i32 = arith.constant 0 : i32
    %0 = arith.cmpi eq, %arg0, %c0_i32 : i32
    %1 = arith.extui %0 : i1 to i32
    %c0_i32_0 = arith.constant 0 : i32
    %2 = arith.cmpi ne, %1, %c0_i32_0 : i32
    scf.if %2 {
      %cst_36 = arith.constant 0.000000e+00 : f32
      %120 = vector.broadcast %cst_36 : f32 to vector<1x1xf32>
      %c0_37 = arith.constant 0 : index
      %c0_38 = arith.constant 0 : index
      %121 = vector.load %arg5[%c0_37, %c0_38] : memref<1x1xf32, #tpu.memory_space<vmem>>, vector<1x1xf32>
      tpu.vector_store %arg5[%c0_37, %c0_38], %120 {strides = array<i32>} : memref<1x1xf32, #tpu.memory_space<vmem>>, vector<1x1xf32>,
      %cst_39 = arith.constant 0.000000e+00 : f32
      %122 = vector.broadcast %cst_39 : f32 to vector<1x1xf32>
      %c0_40 = arith.constant 0 : index
      %c0_41 = arith.constant 0 : index
      %123 = vector.load %arg6[%c0_40, %c0_41] : memref<1x1xf32, #tpu.memory_space<vmem>>, vector<1x1xf32>
      tpu.vector_store %arg6[%c0_40, %c0_41], %122 {strides = array<i32>} : memref<1x1xf32, #tpu.memory_space<vmem>>, vector<1x1xf32>,
    } else {
    }
    %c0 = arith.constant 0 : index
    %c0_1 = arith.constant 0 : index
    %3 = vector.load %arg2[%c0, %c0_1] : memref<8x128xf32, #tpu.memory_space<vmem>>, vector<8x128xf32>
    %c0_2 = arith.constant 0 : index
    %c0_3 = arith.constant 0 : index
    %4 = vector.load %arg3[%c0_2, %c0_3] : memref<8x4xi32, #tpu.memory_space<vmem>>, vector<8x4xi32>
    %c0_4 = arith.constant 0 : index
    %5 = memref.load %arg1[%c0_4] : memref<1xi32, #tpu.memory_space<smem>>
    %6 = tpu.iota {dimensions = array<i32: 1>} : vector<8x128xi32>
    %cst = arith.constant 0.000000e+00 : f32
    %7 = vector.broadcast %cst : f32 to vector<8x1xf32>
    %cst_5 = arith.constant 0.000000e+00 : f32
    %8 = vector.broadcast %cst_5 : f32 to vector<8x1xf32>
    %9 = vector.extract_strided_slice %4 {offsets = [0, 0], sizes = [8, 1], strides = [1, 1]} : vector<8x4xi32> to vector<8x1xi32>
    %10 = vector.broadcast %5 : i32 to vector<8x1xi32>
    %11 = arith.cmpi ne, %9, %10 : vector<8x1xi32>
    %c0_i32_6 = arith.constant 0 : i32
    %12 = vector.broadcast %c0_i32_6 : i32 to vector<8x1xi32>
    %13 = arith.cmpi sge, %9, %12 : vector<8x1xi32>
    %c32_i32 = arith.constant 32 : i32
    %14 = vector.broadcast %c32_i32 : i32 to vector<8x1xi32>
    %15 = arith.cmpi slt, %9, %14 : vector<8x1xi32>
    %16 = arith.andi %13, %15 : vector<8x1xi1>
    %c0_i32_7 = arith.constant 0 : i32
    %17 = vector.broadcast %c0_i32_7 : i32 to vector<8x1xi32>
    %18 = arith.addi %9, %17 : vector<8x1xi32>
    %19 = vector.broadcast %18 : vector<8x1xi32> to vector<8x128xi32>
    %20 = arith.cmpi eq, %6, %19 : vector<8x128xi32>
    %21 = vector.broadcast %11 : vector<8x1xi1> to vector<8x128xi1>
    %22 = arith.andi %20, %21 : vector<8x128xi1>
    %23 = vector.broadcast %16 : vector<8x1xi1> to vector<8x128xi1>
    %24 = arith.andi %22, %23 : vector<8x128xi1>
    %cst_8 = arith.constant 0.000000e+00 : f32
    %25 = vector.broadcast %cst_8 : f32 to vector<8x128xf32>
    %26 = arith.select %24, %3, %25 : vector<8x128xi1>, vector<8x128xf32>
    %cst_9 = arith.constant dense<0.000000e+00> : vector<8xf32>
    %27 = vector.multi_reduction <add>, %26, %cst_9 [1] : vector<8x128xf32> to vector<8xf32>
    %28 = vector.shape_cast %27 : vector<8xf32> to vector<8x1xf32>
    %29 = arith.addf %7, %28 : vector<8x1xf32>
    %30 = arith.extui %11 : vector<8x1xi1> to vector<8x1xi32>
    %31 = arith.sitofp %30 : vector<8x1xi32> to vector<8x1xf32>
    %32 = arith.addf %8, %31 : vector<8x1xf32>
    %33 = vector.extract_strided_slice %4 {offsets = [0, 1], sizes = [8, 1], strides = [1, 1]} : vector<8x4xi32> to vector<8x1xi32>
    %34 = vector.broadcast %5 : i32 to vector<8x1xi32>
    %35 = arith.cmpi ne, %33, %34 : vector<8x1xi32>
    %c0_i32_10 = arith.constant 0 : i32
    %36 = vector.broadcast %c0_i32_10 : i32 to vector<8x1xi32>
    %37 = arith.cmpi sge, %33, %36 : vector<8x1xi32>
    %c32_i32_11 = arith.constant 32 : i32
    %38 = vector.broadcast %c32_i32_11 : i32 to vector<8x1xi32>
    %39 = arith.cmpi slt, %33, %38 : vector<8x1xi32>
    %40 = arith.andi %37, %39 : vector<8x1xi1>
    %c32_i32_12 = arith.constant 32 : i32
    %41 = vector.broadcast %c32_i32_12 : i32 to vector<8x1xi32>
    %42 = arith.addi %33, %41 : vector<8x1xi32>
    %43 = vector.broadcast %42 : vector<8x1xi32> to vector<8x128xi32>
    %44 = arith.cmpi eq, %6, %43 : vector<8x128xi32>
    %45 = vector.broadcast %35 : vector<8x1xi1> to vector<8x128xi1>
    %46 = arith.andi %44, %45 : vector<8x128xi1>
    %47 = vector.broadcast %40 : vector<8x1xi1> to vector<8x128xi1>
    %48 = arith.andi %46, %47 : vector<8x128xi1>
    %cst_13 = arith.constant 0.000000e+00 : f32
    %49 = vector.broadcast %cst_13 : f32 to vector<8x128xf32>
    %50 = arith.select %48, %3, %49 : vector<8x128xi1>, vector<8x128xf32>
    %cst_14 = arith.constant dense<0.000000e+00> : vector<8xf32>
    %51 = vector.multi_reduction <add>, %50, %cst_14 [1] : vector<8x128xf32> to vector<8xf32>
    %52 = vector.shape_cast %51 : vector<8xf32> to vector<8x1xf32>
    %53 = arith.addf %29, %52 : vector<8x1xf32>
    %54 = arith.extui %35 : vector<8x1xi1> to vector<8x1xi32>
    %55 = arith.sitofp %54 : vector<8x1xi32> to vector<8x1xf32>
    %56 = arith.addf %32, %55 : vector<8x1xf32>
    %57 = vector.extract_strided_slice %4 {offsets = [0, 2], sizes = [8, 1], strides = [1, 1]} : vector<8x4xi32> to vector<8x1xi32>
    %58 = vector.broadcast %5 : i32 to vector<8x1xi32>
    %59 = arith.cmpi ne, %57, %58 : vector<8x1xi32>
    %c0_i32_15 = arith.constant 0 : i32
    %60 = vector.broadcast %c0_i32_15 : i32 to vector<8x1xi32>
    %61 = arith.cmpi sge, %57, %60 : vector<8x1xi32>
    %c32_i32_16 = arith.constant 32 : i32
    %62 = vector.broadcast %c32_i32_16 : i32 to vector<8x1xi32>
    %63 = arith.cmpi slt, %57, %62 : vector<8x1xi32>
    %64 = arith.andi %61, %63 : vector<8x1xi1>
    %c64_i32 = arith.constant 64 : i32
    %65 = vector.broadcast %c64_i32 : i32 to vector<8x1xi32>
    %66 = arith.addi %57, %65 : vector<8x1xi32>
    %67 = vector.broadcast %66 : vector<8x1xi32> to vector<8x128xi32>
    %68 = arith.cmpi eq, %6, %67 : vector<8x128xi32>
    %69 = vector.broadcast %59 : vector<8x1xi1> to vector<8x128xi1>
    %70 = arith.andi %68, %69 : vector<8x128xi1>
    %71 = vector.broadcast %64 : vector<8x1xi1> to vector<8x128xi1>
    %72 = arith.andi %70, %71 : vector<8x128xi1>
    %cst_17 = arith.constant 0.000000e+00 : f32
    %73 = vector.broadcast %cst_17 : f32 to vector<8x128xf32>
    %74 = arith.select %72, %3, %73 : vector<8x128xi1>, vector<8x128xf32>
    %cst_18 = arith.constant dense<0.000000e+00> : vector<8xf32>
    %75 = vector.multi_reduction <add>, %74, %cst_18 [1] : vector<8x128xf32> to vector<8xf32>
    %76 = vector.shape_cast %75 : vector<8xf32> to vector<8x1xf32>
    %77 = arith.addf %53, %76 : vector<8x1xf32>
    %78 = arith.extui %59 : vector<8x1xi1> to vector<8x1xi32>
    %79 = arith.sitofp %78 : vector<8x1xi32> to vector<8x1xf32>
    %80 = arith.addf %56, %79 : vector<8x1xf32>
    %81 = vector.extract_strided_slice %4 {offsets = [0, 3], sizes = [8, 1], strides = [1, 1]} : vector<8x4xi32> to vector<8x1xi32>
    %82 = vector.broadcast %5 : i32 to vector<8x1xi32>
    %83 = arith.cmpi ne, %81, %82 : vector<8x1xi32>
    %c0_i32_19 = arith.constant 0 : i32
    %84 = vector.broadcast %c0_i32_19 : i32 to vector<8x1xi32>
    %85 = arith.cmpi sge, %81, %84 : vector<8x1xi32>
    %c32_i32_20 = arith.constant 32 : i32
    %86 = vector.broadcast %c32_i32_20 : i32 to vector<8x1xi32>
    %87 = arith.cmpi slt, %81, %86 : vector<8x1xi32>
    %88 = arith.andi %85, %87 : vector<8x1xi1>
    %c96_i32 = arith.constant 96 : i32
    %89 = vector.broadcast %c96_i32 : i32 to vector<8x1xi32>
    %90 = arith.addi %81, %89 : vector<8x1xi32>
    %91 = vector.broadcast %90 : vector<8x1xi32> to vector<8x128xi32>
    %92 = arith.cmpi eq, %6, %91 : vector<8x128xi32>
    %93 = vector.broadcast %83 : vector<8x1xi1> to vector<8x128xi1>
    %94 = arith.andi %92, %93 : vector<8x128xi1>
    %95 = vector.broadcast %88 : vector<8x1xi1> to vector<8x128xi1>
    %96 = arith.andi %94, %95 : vector<8x128xi1>
    %cst_21 = arith.constant 0.000000e+00 : f32
    %97 = vector.broadcast %cst_21 : f32 to vector<8x128xf32>
    %98 = arith.select %96, %3, %97 : vector<8x128xi1>, vector<8x128xf32>
    %cst_22 = arith.constant dense<0.000000e+00> : vector<8xf32>
    %99 = vector.multi_reduction <add>, %98, %cst_22 [1] : vector<8x128xf32> to vector<8xf32>
    %100 = vector.shape_cast %99 : vector<8xf32> to vector<8x1xf32>
    %101 = arith.addf %77, %100 : vector<8x1xf32>
    %102 = arith.extui %83 : vector<8x1xi1> to vector<8x1xi32>
    %103 = arith.sitofp %102 : vector<8x1xi32> to vector<8x1xf32>
    %104 = arith.addf %80, %103 : vector<8x1xf32>
    %c0_23 = arith.constant 0 : index
    %c0_24 = arith.constant 0 : index
    %105 = vector.load %arg5[%c0_23, %c0_24] : memref<1x1xf32, #tpu.memory_space<vmem>>, vector<1x1xf32>
    %cst_25 = arith.constant 0.000000e+00 : f32
    %106 = vector.broadcast %cst_25 : f32 to vector<8x1xf32>
    %107 = arith.subf %106, %101 : vector<8x1xf32>
    %cst_26 = arith.constant dense<0.000000e+00> : vector<1xf32>
    %108 = vector.multi_reduction <add>, %107, %cst_26 [0] : vector<8x1xf32> to vector<1xf32>
    %109 = vector.shape_cast %108 : vector<1xf32> to vector<1x1xf32>
    %110 = arith.addf %105, %109 : vector<1x1xf32>
    %c0_27 = arith.constant 0 : index
    %c0_28 = arith.constant 0 : index
    %111 = vector.load %arg5[%c0_27, %c0_28] : memref<1x1xf32, #tpu.memory_space<vmem>>, vector<1x1xf32>
    tpu.vector_store %arg5[%c0_27, %c0_28], %110 {strides = array<i32>} : memref<1x1xf32, #tpu.memory_space<vmem>>, vector<1x1xf32>,
    %c0_29 = arith.constant 0 : index
    %c0_30 = arith.constant 0 : index
    %112 = vector.load %arg6[%c0_29, %c0_30] : memref<1x1xf32, #tpu.memory_space<vmem>>, vector<1x1xf32>
    %cst_31 = arith.constant dense<0.000000e+00> : vector<1xf32>
    %113 = vector.multi_reduction <add>, %104, %cst_31 [0] : vector<8x1xf32> to vector<1xf32>
    %114 = vector.shape_cast %113 : vector<1xf32> to vector<1x1xf32>
    %115 = arith.addf %112, %114 : vector<1x1xf32>
    %c0_32 = arith.constant 0 : index
    %c0_33 = arith.constant 0 : index
    %116 = vector.load %arg6[%c0_32, %c0_33] : memref<1x1xf32, #tpu.memory_space<vmem>>, vector<1x1xf32>
    tpu.vector_store %arg6[%c0_32, %c0_33], %115 {strides = array<i32>} : memref<1x1xf32, #tpu.memory_space<vmem>>, vector<1x1xf32>,
    %c0_i32_34 = arith.constant 0 : i32
    %117 = arith.cmpi eq, %arg0, %c0_i32_34 : i32
    %118 = arith.extui %117 : i1 to i32
    %c0_i32_35 = arith.constant 0 : i32
    %119 = arith.cmpi ne, %118, %c0_i32_35 : i32
    scf.if %119 {
      %c0_36 = arith.constant 0 : index
      %c0_37 = arith.constant 0 : index
      %120 = vector.load %arg5[%c0_36, %c0_37] : memref<1x1xf32, #tpu.memory_space<vmem>>, vector<1x1xf32>
      %c0_38 = arith.constant 0 : index
      %c0_39 = arith.constant 0 : index
      %121 = vector.load %arg6[%c0_38, %c0_39] : memref<1x1xf32, #tpu.memory_space<vmem>>, vector<1x1xf32>
      %122 = arith.divf %120, %121 : vector<1x1xf32>
      %c0_40 = arith.constant 0 : index
      %c0_41 = arith.constant 0 : index
      %123 = vector.load %arg4[%c0_40, %c0_41] : memref<1x1xf32, #tpu.memory_space<vmem>>, vector<1x1xf32>
      tpu.vector_store %arg4[%c0_40, %c0_41], %122 {strides = array<i32>} : memref<1x1xf32, #tpu.memory_space<vmem>>, vector<1x1xf32>,
    } else {
    }
    return
  }
  func.func @transform_0(%arg0: i32) -> i32 {
    %c0_i32 = arith.constant 0 : i32
    %c0_i32_0 = arith.constant 0 : i32
    return %c0_i32 : i32
  }
  func.func @transform_1(%arg0: i32) -> (i32, i32) {
    %c0_i32 = arith.constant 0 : i32
    %c0_i32_0 = arith.constant 0 : i32
    return %arg0, %c0_i32 : i32, i32
  }
  func.func @transform_2(%arg0: i32) -> (i32, i32) {
    %c0_i32 = arith.constant 0 : i32
    %c0_i32_0 = arith.constant 0 : i32
    return %arg0, %c0_i32 : i32, i32
  }
  func.func @transform_3(%arg0: i32) -> (i32, i32) {
    %c0_i32 = arith.constant 0 : i32
    %c0_i32_0 = arith.constant 0 : i32
    %c0_i32_1 = arith.constant 0 : i32
    return %c0_i32, %c0_i32_0 : i32, i32
  }
}

</mosaic_0001>

<bundles_post_ra>
// kernel: tpu_custom_call.1
= control target key start
LH: loop header
LB: loop body
LE: loop exit
PB: predicated region body
PF: predicated region fallthrough
CT: control target
= control target key end

     0   :  { %v209_v2 = vmov 0   ;;  %v210_v3 = vmov 1   ;;  %s263_s0 = inlined_call_operand.<no memory space> [shape: s32[1], index: 0, kind: input, shape index: {}]   ;;  %s264_s1 = inlined_call_operand.vmem [shape: f32[8,128], index: 1, kind: input, shape index: {}]   ;;  %s265_s2 = inlined_call_operand.vmem [shape: s32[8,4], index: 2, kind: input, shape index: {}]   ;;  %s266_s3 = inlined_call_operand.hbm [shape: f32[1,1], index: 3, kind: output, shape index: {}]  }
   0x1   :  { %v24_v0 = vld [vmem:[%s265_s2] sm:$0xff]  ;;  %v28_v1 = vstv %s263_s0  ;;  %179 = vset.pattern.permute.xlu0 %v209_v2  ;;  %180 = vset.pattern.permute.xlu1 %v210_v3 }
   0x2   :  { %v55_v4 = vadd.s32 32, %v24_v0  ;;  %vm244_vm0 = vcmp.ne.s32.totalorder %v24_v0, %v28_v1  ;;  %vm30_vm1 = vcmp.ge.s32.totalorder %v24_v0, 0  ;;  %vm31_vm2 = vcmp.lt.s32.totalorder %v24_v0, 32 }
   0x3   :  { %9 = vsyncpa [#allocation6], 0  ;;  %34 = vperm.xlu0 %179, %v24_v0   ;;  %v37_v6 = vsel %vm244_vm0, 1, %v209_v2  ;;  %vm20_vm3 = vcmask 0   ;;  %v211_v7 = vmov 0.0   ;;  %v79_v9 = vadd.s32 64, %v24_v0 }
   0x4   :  { %57 = vperm.xlu1 %180, %v55_v4   ;;  %vm32_vm4 = vmand %vm30_vm1, %vm31_vm2  ;;  %21 = vst.msk [vmem:[#allocation2] sm:$0x1] %vm20_vm3, %v211_v7  ;;  %v212_v10 = vmov 2   ;;  %v102_v11 = vadd.s32 96, %v24_v0  ;;  %v213_v12 = vmov 3   ;;  %v169_v13 = vsel %vm244_vm0, 1.0, %v211_v7 }
   0x5   :  { %22 = vst.msk [vmem:[#allocation3] sm:$0x1] %vm20_vm3, %v211_v7  ;;  %v43_v8 = vsel %vm32_vm4, 1, %v209_v2  ;;  %s214_s0 = smov 126   ;;  %s215_s2 = smov 127   ;;  %v26_v14 = vlaneseq  ;;  %v23_v21 = vld [vmem:[%s264_s1] sm:$0xff] }
   0x6   :  { %s216_s1 = smov 125   ;;  %s217_s18 = smov [#allocation5]  }
   0x7   :  { %39 = vperm.xlu0 %179, %v37_v6   ;;  %v27_v17 = vand.u32 127, %v26_v14  ;;  %s161_s19 = sshll.u32 %s217_s18, 4  ;;  %s162_s19 = int_to_ptr.vmem [resolvable:$true] %s161_s19 }
   0x8   :  { %61 = vperm.xlu1 %180, %v37_v6   ;;  %s187_s20 = scalar_lea.vmem %s162_s19, 16  ;;  %s191_s21 = scalar_lea.vmem %s162_s19, 32 }
   0x9   :  { %p188_p0 = scmp.ne.s32.totalorder %s162_s19, %s187_s20  ;;  %p192_p1 = scmp.lt.s32.totalorder %s162_s19, %s162_s19 }
   0xa   :  { %p193_p2 = scmp.lt.s32.totalorder %s191_s21, %s187_s20 }
   0xb   :  { %45 = vperm.xlu0 %179, %v43_v8   ;;  %v125_v61 = vld [vmem:[#allocation2] sm:$0x1] }
   0xc   :  { %66 = vperm.xlu1 %180, %v43_v8   ;;  %v136_v55 = vld [vmem:[#allocation3] sm:$0x1]  ;;  %p194_p3 = por %p193_p2, %p192_p1 }
   0xe   :  { %p195_p4 = pnand %p194_p3, %p188_p0 }
   0xf   :  { %181 = vset.pattern.permute.xlu0 %v212_v10 }
  0x10   :  { %182 = vset.pattern.permute.xlu1 %v212_v10  ;;  %81 = vperm.xlu0 %181, %v79_v9  }
  0x11   :  { %85 = vperm.xlu1 %182, %v37_v6  }
  0x14   :  { %183 = vset.pattern.permute.xlu0 %v213_v12 }
  0x15   :  { %90 = vperm.xlu1 %182, %v43_v8   ;;  %104 = vperm.xlu0 %183, %v102_v11  }
  0x19   :  { %184 = vset.pattern.permute.xlu1 %v213_v12  ;;  %98 = vrot.lane.b32.xlu0 %v169_v13, %s214_s0 }
  0x1a   :  { %108 = vperm.xlu1 %184, %v37_v6  }
  0x1e   :  { %113 = vperm.xlu1 %184, %v43_v8  }
  0x22   :  { %75 = vrot.lane.b32.xlu1 %v169_v13, %s215_s2 }
  0x7e   :  { %v35_v15 = vpop.permute.xlu0 %34 }
  0x7f   :  { %v58_v16 = vpop.permute.xlu1 %57  ;;  %vm36_vm5 = vcmp.eq.s32.totalorder %v27_v17, %v35_v15 }
  0x80   :  { %vm59_vm8 = vcmp.eq.s32.totalorder %v27_v17, %v58_v16 }
  0x82   :  { %v40_v18 = vpop.permute.xlu0 %39 }
  0x83   :  { %vm41_vm6 = vcmp.eq.s32.totalorder %v40_v18, 1  ;;  %v62_v19 = vpop.permute.xlu1 %61 }
  0x84   :  { %vm63_vm7 = vcmp.eq.s32.totalorder %v62_v19, 1  ;;  %vm42_vm9 = vmand %vm36_vm5, %vm41_vm6 }
  0x85   :  { %vm64_vm10 = vmand %vm59_vm8, %vm63_vm7 }
  0x86   :  { %v46_v20 = vpop.permute.xlu0 %45 }
  0x87   :  { %vm47_vm11 = vcmp.eq.s32.totalorder %v46_v20, 1  ;;  %v67_v22 = vpop.permute.xlu1 %66 }
  0x88   :  { %vm68_vm12 = vcmp.eq.s32.totalorder %v67_v22, 1  ;;  %vm48_vm13 = vmand %vm42_vm9, %vm47_vm11 }
  0x89   :  { %v49_v23 = vsel %vm48_vm13, %v23_v21, 0.0  ;;  %vm69_vm14 = vmand %vm64_vm10, %vm68_vm12  ;;  %vm137_vm10 = vcmask 7168  }
  0x8a   :  { %50 = vadd.xlane.f32.xlu0 %v49_v23  ;;  %v70_v24 = vsel %vm69_vm14, %v23_v21, 0.0 }
  0x8b   :  { %71 = vadd.xlane.f32.xlu1 %v70_v24  ;;  %v82_v25 = vpop.permute.xlu0 %81 }
  0x8c   :  { %v86_v26 = vpop.permute.xlu1 %85  ;;  %vm83_vm0 = vcmp.eq.s32.totalorder %v27_v17, %v82_v25 }
  0x8d   :  { %vm87_vm15 = vcmp.eq.s32.totalorder %v86_v26, 1 }
  0x8e   :  { %vm88_vm1 = vmand %vm83_vm0, %vm87_vm15 }
  0x90   :  { %v91_v27 = vpop.permute.xlu1 %90  ;;  %v105_v28 = vpop.permute.xlu0 %104 }
  0x91   :  { %vm92_vm2 = vcmp.eq.s32.totalorder %v91_v27, 1  ;;  %vm106_vm5 = vcmp.eq.s32.totalorder %v27_v17, %v105_v28 }
  0x92   :  { %vm93_vm4 = vmand %vm88_vm1, %vm92_vm2 }
  0x93   :  { %v94_v29 = vsel %vm93_vm4, %v23_v21, 0.0 }
  0x94   :  { %95 = vadd.xlane.f32.xlu1 %v94_v29  ;;  %v99_v36 = vpop.permute.xlu0 %98 }
  0x95   :  { %v109_v30 = vpop.permute.xlu1 %108 }
  0x96   :  { %vm110_vm6 = vcmp.eq.s32.totalorder %v109_v30, 1 }
  0x97   :  { %vm111_vm7 = vmand %vm106_vm5, %vm110_vm6 }
  0x99   :  { %v114_v31 = vpop.permute.xlu1 %113 }
  0x9a   :  { %vm115_vm8 = vcmp.eq.s32.totalorder %v114_v31, 1 }
  0x9b   :  { %vm116_vm9 = vmand %vm111_vm7, %vm115_vm8 }
  0x9c   :  { %v117_v32 = vsel %vm116_vm9, %v23_v21, 0.0 }
  0x9d   :  { %118 = vadd.xlane.f32.xlu0 %v117_v32  ;;  %v76_v33 = vpop.permute.xlu1 %75 }
  0x9e   :  { %v78_v35 = vadd.f32 %v169_v13, %v76_v33 }
  0xa0   :  { %v101_v38 = vadd.f32 %v99_v36, %v78_v35 }
  0xa5   :  { %121 = vrot.lane.b32.xlu1 %v169_v13, %s216_s1 }
 0x113   :  { %v51_v39 = vpop.xlane.xlu0 %50 }
 0x114   :  { %v72_v34 = vpop.xlane.xlu1 %71 }
 0x115   :  { %v73_v42 = vadd.f32 %v72_v34, %v51_v39 }
 0x11d   :  { %v96_v37 = vpop.xlane.xlu1 %95 }
 0x11e   :  { %v97_v44 = vadd.f32 %v96_v37, %v73_v42 }
 0x121   :  { %v122_v40 = vpop.permute.xlu1 %121 }
 0x122   :  { %v124_v41 = vadd.f32 %v122_v40, %v101_v38 }
 0x124   :  { %v138_v43 = vsel %vm137_vm10, %v124_v41, 0.0 }
 0x125   :  { %v139_v45 = vrot.slane %v138_v43, 4 }
 0x126   :  { %v119_v46 = vpop.xlane.xlu0 %118 }
 0x127   :  { %v140_v47 = vadd.f32 %v139_v45, %v138_v43  ;;  %v120_v48 = vadd.f32 %v119_v46, %v97_v44 }
 0x129   :  { %v141_v49 = vrot.slane %v140_v47, 2  ;;  %v126_v50 = vsub.f32 0.0, %v120_v48 }
 0x12b   :  { %v142_v51 = vadd.f32 %v141_v49, %v140_v47  ;;  %v127_v52 = vrot.slane %v126_v50, 4 }
 0x12d   :  { %v143_v53 = vrot.slane %v142_v51, 1  ;;  %v128_v54 = vadd.f32 %v127_v52, %v126_v50 }
 0x12f   :  { %v144_v56 = vadd.f32 %v143_v53, %v142_v51  ;;  %v129_v57 = vrot.slane %v128_v54, 2 }
 0x131   :  { %v145_v58 = vadd.f32 %v144_v56, %v136_v55  ;;  %v130_v59 = vadd.f32 %v129_v57, %v128_v54 }
 0x133   :  { %146 = vst.msk [vmem:[#allocation3] sm:$0x1] %vm20_vm3, %v145_v58  ;;  %v131_v60 = vrot.slane %v130_v59, 1 }
 0x135   :  { %v132_v62 = vadd.f32 %v131_v60, %v130_v59 }
 0x137   :  { %v133_v63 = vadd.f32 %v132_v62, %v125_v61 }
 0x139   :  { %135 = vst.msk [vmem:[#allocation2] sm:$0x1] %vm20_vm3, %v133_v63 }
 0x13a   :  { %v151_v0 = vld [vmem:[#allocation3] sm:$0x1] }
 0x13b   :  { %185 = vrcp.f32 %v151_v0 }
 0x140   :  { %v150_v2 = vld [vmem:[#allocation2] sm:$0x1] }
 0x148   :  { %v186_v1 = vpop.eup %185 }
 0x149   :  { %v153_v3 = vmul.f32 %v186_v1, %v150_v2 }
 0x14b   :  { %154 = vst.msk [vmem:[#allocation5] sm:$0x1] %vm20_vm3, %v153_v3 }
 0x14c   :  { %198 = shalt.err (!%p195_p4)
}
 0x14d   :  { %164 = dma.vmem_to_hbm [thread:$0]  %s162_s19, 16, %s266_s3, [#allocation6]  }
 0x14e   :  { %207 = dma.done.wait [#allocation6], 16  }
 0x14f   :  { %208 = vsyncadd [#allocation6], 4294967280 }
 0x150   :  { %168 = vsyncpa [#allocation6], 1 }

</bundles_post_ra>
